<compile_context>
chip_gen: v7x
topology: tpu7x:2x2x1
jax: 0.10.0
libtpu: 0.0.40
codegen_flags: <defaults>
</compile_context>

<pallas_src>
import functools

import jax
import jax.numpy as jnp
from jax import lax
from jax.experimental import pallas as pl
from jax.experimental.pallas import tpu as pltpu


def qnet_kernel(x_ref, w1_ref, b1_ref, w2_ref, b2_ref, w3_ref, b3_ref, o_ref,
                *, chunk):
    """Fused 3-layer MLP on one (TILE_B, 4) batch tile.

    Weights/biases are whole-array VMEM-resident blocks (constant index_map,
    DMA'd once).  The tile is processed in `chunk`-row slabs so (chunk, 128)
    activations fit in vregs without spilling.
    """
    w1 = w1_ref[...]          # (4, 128)
    b1 = b1_ref[...]          # (1, 128)
    w2 = w2_ref[...]          # (128, 128)
    b2 = b2_ref[...]          # (1, 128)
    w3 = w3_ref[...]          # (128, 128)  zero-padded fc3 weight
    b3 = b3_ref[...]          # (1, 128)    zero-padded fc3 bias

    # fc1 rows hoisted out of the loop (loop-invariant VPU operands).
    w1_r0 = w1[0:1, :]
    w1_r1 = w1[1:2, :]
    w1_r2 = w1[2:3, :]
    w1_r3 = w1[3:4, :]

    n_out = o_ref.shape[1]               # 2
    tile_b = x_ref.shape[0]
    n_chunks = tile_b // chunk            # static (tile_b, chunk powers of two)

    def body(c, carry):
        r = pl.multiple_of(c * chunk, chunk)
        x = x_ref[pl.ds(r, chunk), :]                                  # (chunk, 4)
        # fc1 on the VPU: K=4 "matmul" as 4 broadcast mult-adds (no MXU
        # round-trip on the critical path).
        h1 = (x[:, 0:1] * w1_r0 + x[:, 1:2] * w1_r1
              + x[:, 2:3] * w1_r2 + x[:, 3:4] * w1_r3 + b1)            # (chunk, 128)
        h1 = jnp.maximum(h1, 0.0)
        h2 = jnp.dot(h1, w2, preferred_element_type=jnp.float32) + b2  # (chunk, 128)
        h2 = jnp.maximum(h2, 0.0)
        out = jnp.dot(h2, w3, preferred_element_type=jnp.float32) + b3 # (chunk, 128)
        # Store only the useful lanes -> (padded_b, 2) HBM output.
        o_ref[pl.ds(r, chunk), :] = out[:, :n_out].astype(o_ref.dtype)
        return carry

    lax.fori_loop(0, n_chunks, body, 0, unroll=True)


def _round_up(x, m):
    return ((x + m - 1) // m) * m


def qnet_forward(x, padded_params):
    """x: (B, 4) float32 -> (B, 2) float32.

    `padded_params` must have the fc3 layer lane-padded to 128 outputs
    (see pad_output_layer).
    """
    w1, b1, w2, b2, w3p, b3p = padded_params
    B = x.shape[0]

    # Tile sizing: power-of-two batch tile, capped at 2048 rows.  Per-step
    # VMEM is tiny after the output shrink (double-buffered x tile ~1 MiB
    # lane-padded + out tile ~1 MiB + resident weights ~130 KiB), far under
    # the default scoped VMEM on every generation.  When the batch allows,
    # force >= 2 grid steps so the "parallel" axis shards over both v7x TCs.
    MIN_TILE = 8
    MAX_TILE = 2048
    b_pow2 = max(MIN_TILE, pl.next_power_of_2(max(B, 1)))
    tile_b = min(MAX_TILE, b_pow2)
    if b_pow2 >= 2 * MIN_TILE:
        tile_b = min(tile_b, max(MIN_TILE, b_pow2 // 2))
    chunk = min(128, tile_b)   # (128,128) f32 = 16 vregs: no spills in hot loop

    padded_b = _round_up(B, tile_b)
    if padded_b != B:
        x = jnp.pad(x, ((0, padded_b - B), (0, 0)))

    grid = (padded_b // tile_b,)

    out = pl.pallas_call(
        functools.partial(qnet_kernel, chunk=chunk),
        out_shape=jax.ShapeDtypeStruct((padded_b, 2), jnp.float32),
        grid=grid,
        in_specs=[
            # x: tiled over batch.
            pl.BlockSpec((tile_b, 4), lambda i: (i, 0)),
            # Weights/biases: constant block index -> DMA'd once, VMEM-resident.
            pl.BlockSpec(w1.shape, lambda i: (0, 0)),
            pl.BlockSpec(b1.shape, lambda i: (0, 0)),
            pl.BlockSpec(w2.shape, lambda i: (0, 0)),
            pl.BlockSpec(b2.shape, lambda i: (0, 0)),
            pl.BlockSpec(w3p.shape, lambda i: (0, 0)),
            pl.BlockSpec(b3p.shape, lambda i: (0, 0)),
        ],
        # Narrow output: only the 2 Q-value lanes hit HBM.
        out_specs=pl.BlockSpec((tile_b, 2), lambda i: (i, 0)),
        compiler_params=pltpu.CompilerParams(
            dimension_semantics=("parallel",),   # megacore sharding on v7x
        ),
    )(x, w1, b1, w2, b2, w3p, b3p)

    # Only batch padding to slice away (no lane slice needed anymore).
    return out[:B]


def init_params(key):
    """Deterministic synthetic parameters matching the nn.Linear shapes.

    PyTorch stores Linear weights as (out, in); we store the transpose
    (in, out) so the kernel computes x @ W + b directly.  Biases are (1, out)
    rows for clean VMEM layout / broadcast.
    """
    k1, k2, k3, k4, k5, k6 = jax.random.split(key, 6)

    def uniform(k, shape, fan_in):
        bound = 1.0 / jnp.sqrt(fan_in)
        return jax.random.uniform(k, shape, jnp.float32, -bound, bound)

    w1 = uniform(k1, (4, 128), 4.0)
    b1 = uniform(k2, (1, 128), 4.0)
    w2 = uniform(k3, (128, 128), 128.0)
    b2 = uniform(k4, (1, 128), 128.0)
    w3 = uniform(k5, (128, 2), 128.0)
    b3 = uniform(k6, (1, 2), 128.0)
    return (w1, b1, w2, b2, w3, b3)


def pad_output_layer(params):
    """Zero-pad fc3 to 128 output columns (dense MXU operand; store stays narrow)."""
    w1, b1, w2, b2, w3, b3 = params
    w3p = jnp.pad(w3, ((0, 0), (0, 128 - w3.shape[1])))
    b3p = jnp.pad(b3, ((0, 0), (0, 128 - b3.shape[1])))
    return (w1, b1, w2, b2, w3p, b3p)


def qnet_reference(x, params):
    w1, b1, w2, b2, w3, b3 = params
    h1 = jax.nn.relu(x @ w1 + b1)
    h2 = jax.nn.relu(h1 @ w2 + b2)
    return h2 @ w3 + b3


# TODO(synk): Qnet.sample_action (host-side Python RNG / epsilon-greedy argmax)
# is policy glue, not part of the forward pass; do it outside the kernel.


if __name__ == "__main__":
    key = jax.random.PRNGKey(0)
    kp, kx1, kx2 = jax.random.split(key, 3)

    params = init_params(kp)
    kernel_params = pad_output_layer(params)

    # CartPole-style observation: batch of 8 states, 4 features each.
    x_small = jax.random.normal(kx1, (8, 4), dtype=jnp.float32)
    out_small = jax.block_until_ready(qnet_forward(x_small, kernel_params))
    ref_small = qnet_reference(x_small, params)
    assert out_small.shape == (8, 2)
    assert jnp.allclose(out_small, ref_small, atol=1e-4, rtol=1e-4), (
        f"max abs err {jnp.max(jnp.abs(out_small - ref_small))}")

    # Non-trivial batch: exercises batch padding, multi-step grid (>=2 steps
    # -> both v7x TCs), and the multi-chunk inner loop.
    x_big = jax.random.normal(kx2, (300, 4), dtype=jnp.float32)
    out_big = jax.block_until_ready(qnet_forward(x_big, kernel_params))
    ref_big = qnet_reference(x_big, params)
    assert out_big.shape == (300, 2)
    assert jnp.allclose(out_big, ref_big, atol=1e-4, rtol=1e-4), (
        f"max abs err {jnp.max(jnp.abs(out_big - ref_big))}")

    print("KERNEL_OK")
</pallas_src>

<mosaic_0001>
module attributes {stable_mosaic.version = 11 : i64} {
  func.func @qnet_kernel(%arg0: i32, %arg1: memref<8x4xf32, #tpu.memory_space<vmem>>, %arg2: memref<4x128xf32, #tpu.memory_space<vmem>>, %arg3: memref<1x128xf32, #tpu.memory_space<vmem>>, %arg4: memref<128x128xf32, #tpu.memory_space<vmem>>, %arg5: memref<1x128xf32, #tpu.memory_space<vmem>>, %arg6: memref<128x128xf32, #tpu.memory_space<vmem>>, %arg7: memref<1x128xf32, #tpu.memory_space<vmem>>, %arg8: memref<8x2xf32, #tpu.memory_space<vmem>>) attributes {dimension_semantics = [#tpu.dimension_semantics<parallel>], iteration_bounds = array<i64: 1>, scalar_prefetch = 0 : i64, scratch_operands = 0 : i64, tpu.core_type = #tpu.core_type<tc>, window_params = [{transform_indices = @transform_0, window_bounds = array<i64: 8, 4>}, {pipeline_mode = #tpu.pipeline_mode<synchronous>, transform_indices = @transform_1, window_bounds = array<i64: 4, 128>}, {pipeline_mode = #tpu.pipeline_mode<synchronous>, transform_indices = @transform_2, window_bounds = array<i64: 1, 128>}, {pipeline_mode = #tpu.pipeline_mode<synchronous>, transform_indices = @transform_3, window_bounds = array<i64: 128, 128>}, {pipeline_mode = #tpu.pipeline_mode<synchronous>, transform_indices = @transform_4, window_bounds = array<i64: 1, 128>}, {pipeline_mode = #tpu.pipeline_mode<synchronous>, transform_indices = @transform_5, window_bounds = array<i64: 128, 128>}, {pipeline_mode = #tpu.pipeline_mode<synchronous>, transform_indices = @transform_6, window_bounds = array<i64: 1, 128>}, {transform_indices = @transform_7, window_bounds = array<i64: 8, 2>}]} {
    %c0 = arith.constant 0 : index
    %c0_0 = arith.constant 0 : index
    %0 = vector.load %arg2[%c0, %c0_0] : memref<4x128xf32, #tpu.memory_space<vmem>>, vector<4x128xf32>
    %c0_1 = arith.constant 0 : index
    %c0_2 = arith.constant 0 : index
    %1 = vector.load %arg3[%c0_1, %c0_2] : memref<1x128xf32, #tpu.memory_space<vmem>>, vector<1x128xf32>
    %c0_3 = arith.constant 0 : index
    %c0_4 = arith.constant 0 : index
    %2 = vector.load %arg4[%c0_3, %c0_4] : memref<128x128xf32, #tpu.memory_space<vmem>>, vector<128x128xf32>
    %c0_5 = arith.constant 0 : index
    %c0_6 = arith.constant 0 : index
    %3 = vector.load %arg5[%c0_5, %c0_6] : memref<1x128xf32, #tpu.memory_space<vmem>>, vector<1x128xf32>
    %c0_7 = arith.constant 0 : index
    %c0_8 = arith.constant 0 : index
    %4 = vector.load %arg6[%c0_7, %c0_8] : memref<128x128xf32, #tpu.memory_space<vmem>>, vector<128x128xf32>
    %c0_9 = arith.constant 0 : index
    %c0_10 = arith.constant 0 : index
    %5 = vector.load %arg7[%c0_9, %c0_10] : memref<1x128xf32, #tpu.memory_space<vmem>>, vector<1x128xf32>
    %6 = vector.extract_strided_slice %0 {offsets = [0, 0], sizes = [1, 128], strides = [1, 1]} : vector<4x128xf32> to vector<1x128xf32>
    %7 = vector.extract_strided_slice %0 {offsets = [1, 0], sizes = [1, 128], strides = [1, 1]} : vector<4x128xf32> to vector<1x128xf32>
    %8 = vector.extract_strided_slice %0 {offsets = [2, 0], sizes = [1, 128], strides = [1, 1]} : vector<4x128xf32> to vector<1x128xf32>
    %9 = vector.extract_strided_slice %0 {offsets = [3, 0], sizes = [1, 128], strides = [1, 1]} : vector<4x128xf32> to vector<1x128xf32>
    %c0_i32 = arith.constant 0 : i32
    %c8_i32 = arith.constant 8 : i32
    %10 = arith.muli %c0_i32, %c8_i32 : i32
    %11 = tpu.assume_multiple %10, 8 : i32
    %12 = arith.index_cast %11 : i32 to index
    %c0_11 = arith.constant 0 : index
    %13 = vector.load %arg1[%12, %c0_11] : memref<8x4xf32, #tpu.memory_space<vmem>>, vector<8x4xf32>
    %14 = vector.extract_strided_slice %13 {offsets = [0, 0], sizes = [8, 1], strides = [1, 1]} : vector<8x4xf32> to vector<8x1xf32>
    %15 = vector.broadcast %14 : vector<8x1xf32> to vector<8x128xf32>
    %16 = vector.broadcast %6 : vector<1x128xf32> to vector<8x128xf32>
    %17 = arith.mulf %15, %16 : vector<8x128xf32>
    %18 = vector.extract_strided_slice %13 {offsets = [0, 1], sizes = [8, 1], strides = [1, 1]} : vector<8x4xf32> to vector<8x1xf32>
    %19 = vector.broadcast %18 : vector<8x1xf32> to vector<8x128xf32>
    %20 = vector.broadcast %7 : vector<1x128xf32> to vector<8x128xf32>
    %21 = arith.mulf %19, %20 : vector<8x128xf32>
    %22 = arith.addf %17, %21 : vector<8x128xf32>
    %23 = vector.extract_strided_slice %13 {offsets = [0, 2], sizes = [8, 1], strides = [1, 1]} : vector<8x4xf32> to vector<8x1xf32>
    %24 = vector.broadcast %23 : vector<8x1xf32> to vector<8x128xf32>
    %25 = vector.broadcast %8 : vector<1x128xf32> to vector<8x128xf32>
    %26 = arith.mulf %24, %25 : vector<8x128xf32>
    %27 = arith.addf %22, %26 : vector<8x128xf32>
    %28 = vector.extract_strided_slice %13 {offsets = [0, 3], sizes = [8, 1], strides = [1, 1]} : vector<8x4xf32> to vector<8x1xf32>
    %29 = vector.broadcast %28 : vector<8x1xf32> to vector<8x128xf32>
    %30 = vector.broadcast %9 : vector<1x128xf32> to vector<8x128xf32>
    %31 = arith.mulf %29, %30 : vector<8x128xf32>
    %32 = arith.addf %27, %31 : vector<8x128xf32>
    %33 = vector.broadcast %1 : vector<1x128xf32> to vector<8x128xf32>
    %34 = arith.addf %32, %33 : vector<8x128xf32>
    %cst = arith.constant 0.000000e+00 : f32
    %35 = vector.broadcast %cst : f32 to vector<8x128xf32>
    %36 = arith.maximumf %34, %35 : vector<8x128xf32>
    %cst_12 = arith.constant dense<0.000000e+00> : vector<8x128xf32>
    %37 = tpu.matmul %36, %2, %cst_12 {dimension_numbers = #tpu.dot_dimension_numbers<[1], [0], [0], [1], [0, 0, 1, 1], [], []>} : vector<8x128xf32>, vector<128x128xf32>, vector<8x128xf32> -> vector<8x128xf32>
    %38 = vector.broadcast %3 : vector<1x128xf32> to vector<8x128xf32>
    %39 = arith.addf %37, %38 : vector<8x128xf32>
    %cst_13 = arith.constant 0.000000e+00 : f32
    %40 = vector.broadcast %cst_13 : f32 to vector<8x128xf32>
    %41 = arith.maximumf %39, %40 : vector<8x128xf32>
    %cst_14 = arith.constant dense<0.000000e+00> : vector<8x128xf32>
    %42 = tpu.matmul %41, %4, %cst_14 {dimension_numbers = #tpu.dot_dimension_numbers<[1], [0], [0], [1], [0, 0, 1, 1], [], []>} : vector<8x128xf32>, vector<128x128xf32>, vector<8x128xf32> -> vector<8x128xf32>
    %43 = vector.broadcast %5 : vector<1x128xf32> to vector<8x128xf32>
    %44 = arith.addf %42, %43 : vector<8x128xf32>
    %45 = vector.extract_strided_slice %44 {offsets = [0, 0], sizes = [8, 2], strides = [1, 1]} : vector<8x128xf32> to vector<8x2xf32>
    %46 = arith.index_cast %11 : i32 to index
    %c0_15 = arith.constant 0 : index
    %47 = vector.load %arg8[%46, %c0_15] : memref<8x2xf32, #tpu.memory_space<vmem>>, vector<8x2xf32>
    tpu.vector_store %arg8[%46, %c0_15], %45 {strides = array<i32>} : memref<8x2xf32, #tpu.memory_space<vmem>>, vector<8x2xf32>,
    %c1_i32 = arith.constant 1 : i32
    return
  }
  func.func @transform_0(%arg0: i32) -> (i32, i32) {
    %c0_i32 = arith.constant 0 : i32
    %c0_i32_0 = arith.constant 0 : i32
    return %arg0, %c0_i32 : i32, i32
  }
  func.func @transform_1(%arg0: i32) -> (i32, i32) {
    %c0_i32 = arith.constant 0 : i32
    %c0_i32_0 = arith.constant 0 : i32
    %c0_i32_1 = arith.constant 0 : i32
    return %c0_i32, %c0_i32_0 : i32, i32
  }
  func.func @transform_2(%arg0: i32) -> (i32, i32) {
    %c0_i32 = arith.constant 0 : i32
    %c0_i32_0 = arith.constant 0 : i32
    %c0_i32_1 = arith.constant 0 : i32
    return %c0_i32, %c0_i32_0 : i32, i32
  }
  func.func @transform_3(%arg0: i32) -> (i32, i32) {
    %c0_i32 = arith.constant 0 : i32
    %c0_i32_0 = arith.constant 0 : i32
    %c0_i32_1 = arith.constant 0 : i32
    return %c0_i32, %c0_i32_0 : i32, i32
  }
  func.func @transform_4(%arg0: i32) -> (i32, i32) {
    %c0_i32 = arith.constant 0 : i32
    %c0_i32_0 = arith.constant 0 : i32
    %c0_i32_1 = arith.constant 0 : i32
    return %c0_i32, %c0_i32_0 : i32, i32
  }
  func.func @transform_5(%arg0: i32) -> (i32, i32) {
    %c0_i32 = arith.constant 0 : i32
    %c0_i32_0 = arith.constant 0 : i32
    %c0_i32_1 = arith.constant 0 : i32
    return %c0_i32, %c0_i32_0 : i32, i32
  }
  func.func @transform_6(%arg0: i32) -> (i32, i32) {
    %c0_i32 = arith.constant 0 : i32
    %c0_i32_0 = arith.constant 0 : i32
    %c0_i32_1 = arith.constant 0 : i32
    return %c0_i32, %c0_i32_0 : i32, i32
  }
  func.func @transform_7(%arg0: i32) -> (i32, i32) {
    %c0_i32 = arith.constant 0 : i32
    %c0_i32_0 = arith.constant 0 : i32
    return %arg0, %c0_i32 : i32, i32
  }
}

</mosaic_0001>

<bundles_post_ra>
// kernel: tpu_custom_call.1
= control target key start
LH: loop header
LB: loop body
LE: loop exit
PB: predicated region body
PF: predicated region fallthrough
CT: control target
= control target key end

     0   :  { %12 = vsyncpa [#allocation3], 0  ;;  %s628_s0 = inlined_call_operand.vmem [shape: f32[8,4], index: 0, kind: input, shape index: {}]   ;;  %s629_s1 = inlined_call_operand.vmem [shape: f32[4,128], index: 1, kind: input, shape index: {}]   ;;  %s630_s2 = inlined_call_operand.vmem [shape: f32[1,128], index: 2, kind: input, shape index: {}]   ;;  %s631_s3 = inlined_call_operand.hbm [shape: f32[128,128], index: 3, kind: input, shape index: {}]   ;;  %s632_s4 = inlined_call_operand.vmem [shape: f32[1,128], index: 4, kind: input, shape index: {}]   ;;  %s633_s5 = inlined_call_operand.hbm [shape: f32[128,128], index: 5, kind: input, shape index: {}]   ;;  %s634_s6 = inlined_call_operand.vmem [shape: f32[1,128], index: 6, kind: input, shape index: {}]   ;;  %s635_s7 = inlined_call_operand.vmem [shape: f32[8,2], index: 7, kind: output, shape index: {}]  }
   0x1   :  { %13 = vsyncpa [#allocation5], 0  ;;  %s519_s24 = smov [#allocation2]   ;;  %s471_s28 = scalar_lea.hbm %s631_s3, 2048 }
   0x2   :  { %s25_s25 = sshll.u32 %s519_s24, 4  ;;  %p472_p0 = scmp.ne.s32.totalorder %s631_s3, %s471_s28  ;;  %s26_s25 = int_to_ptr.vmem [resolvable:$true] %s25_s25 }
   0x3   :  { %p475_p1 = scmp.lt.u32.totalorder %s471_s28, %s631_s3 }
   0x5   :  { %p477_p2 = pnand %p475_p1, %p472_p0 }
   0x7   :  { %480 = shalt.err (!%p477_p2)
}
   0x8   :  { %s481_s10 = scalar_lea.vmem %s26_s25, 2048  ;;  %p486_p4 = scmp.lt.s32.totalorder %s26_s25, %s26_s25 }
   0x9   :  { %p482_p3 = scmp.ne.s32.totalorder %s26_s25, %s481_s10  ;;  %p487_p5 = scmp.lt.s32.totalorder %s481_s10, %s481_s10 }
   0xb   :  { %p488_p6 = por %p487_p5, %p486_p4 }
   0xd   :  { %p489_p7 = pnand %p488_p6, %p482_p3 }
   0xf   :  { %492 = shalt.err (!%p489_p7)
}
  0x10   :  { %s520_s11 = smov 128   ;;  %s521_s12 = smov 8  }
  0x11   :  { %31 = dma.hbm_to_vmem [thread:$0]  %s631_s3, 2048, %s26_s25, [#allocation3], %s520_s11, %s520_s11, %s521_s12  }
  0x12   :  { %s522_s15 = smov [#allocation4]   ;;  %s493_s19 = scalar_lea.hbm %s633_s5, 2048 }
  0x13   :  { %s39_s16 = sshll.u32 %s522_s15, 4  ;;  %p494_p8 = scmp.ne.s32.totalorder %s633_s5, %s493_s19  ;;  %s40_s16 = int_to_ptr.vmem [resolvable:$true] %s39_s16 }
  0x14   :  { %p497_p9 = scmp.lt.u32.totalorder %s493_s19, %s633_s5 }
  0x16   :  { %p499_p10 = pnand %p497_p9, %p494_p8 }
  0x18   :  { %502 = shalt.err (!%p499_p10)
}
  0x19   :  { %s503_s24 = scalar_lea.vmem %s40_s16, 2048  ;;  %p508_p12 = scmp.lt.s32.totalorder %s40_s16, %s40_s16 }
  0x1a   :  { %p504_p11 = scmp.ne.s32.totalorder %s40_s16, %s503_s24  ;;  %p509_p13 = scmp.lt.s32.totalorder %s503_s24, %s503_s24 }
  0x1c   :  { %p510_p0 = por %p509_p13, %p508_p12 }
  0x1e   :  { %p511_p1 = pnand %p510_p0, %p504_p11 }
  0x20   :  { %514 = shalt.err (!%p511_p1)
}
  0x21   :  { %45 = dma.hbm_to_vmem [thread:$0]  %s633_s5, 2048, %s40_s16, [#allocation5], %s520_s11, %s520_s11, %s521_s12  }
  0x22   :  { %515 = dma.done.wait [#allocation3], 2048  }
  0x23   :  { %516 = vsyncadd [#allocation3], 4294965248 }
  0x24   :  { %517 = dma.done.wait [#allocation5], 2048  }
  0x25   :  { %518 = vsyncadd [#allocation5], 4294965248  ;;  %v523_v0 = vmov 0   ;;  %v524_v1 = vmov 2   ;;  %v525_v2 = vmov 0.0|0.0   ;;  %v90_v3 = vld [vmem:[%s628_s0] sm:$0xff]  ;;  %v96_v52 = vlaneseq }
  0x26   :  { %466 = vset.pattern.permute.xlu0 %v523_v0  ;;  %468 = vset.pattern.permute.xlu1 %v524_v1  ;;  %v56_v4 = vld [vmem:[#allocation2] sm:$0xff]  ;;  %v57_v5 = vld [vmem:[#allocation2 + $0x8] sm:$0xff]  ;;  %v58_v7 = vld [vmem:[#allocation2 + $0x10] sm:$0xff]  ;;  %v526_v12 = vmov 1   ;;  %v527_v13 = vmov 3   ;;  %vm528_vm0 = vmmov 0  }
  0x27   :  { %407 = vmatprep.subr.bf16.mxu0 %v525_v2  ;;  %431 = vmatprep.subr.bf16.mxu1 %v525_v2  ;;  %v408_v6 = vpack.c.bf16 %v57_v5, %v56_v4  ;;  %v59_v8 = vld [vmem:[#allocation2 + $0x18] sm:$0xff]  ;;  %v60_v10 = vld [vmem:[#allocation2 + $0x20] sm:$0xff]  ;;  %v61_v11 = vld [vmem:[#allocation2 + $0x28] sm:$0xff]  ;;  %v529_v20 = vmov 0.0   ;;  %v97_v53 = vshrl.u32 %v96_v52, 7  ;;  %vm292_vm1 = vcmask 15360  }
  0x28   :  { %93 = vperm.xlu0 %466, %v90_v3   ;;  %112 = vperm.xlu1 %468, %v90_v3   ;;  %v411_v9 = vpack.c.bf16 %v59_v8, %v58_v7  ;;  %v414_v14 = vpack.c.bf16 %v61_v11, %v60_v10  ;;  %v62_v15 = vld [vmem:[#allocation2 + $0x30] sm:$0xff]  ;;  %v63_v16 = vld [vmem:[#allocation2 + $0x38] sm:$0xff]  ;;  %v64_v18 = vld [vmem:[#allocation2 + $0x40] sm:$0xff] }
  0x29   :  { %409 = vmatpush3.bf16.msra.mxu0 %v408_v6  ;;  %v417_v17 = vpack.c.bf16 %v63_v16, %v62_v15  ;;  %v65_v19 = vld [vmem:[#allocation2 + $0x48] sm:$0xff]  ;;  %369 = vmatprep.mubr.msk.f32.mxu0 %vm528_vm0, %v529_v20  ;;  %v66_v22 = vld [vmem:[#allocation2 + $0x50] sm:$0xff]  ;;  %v67_v23 = vld [vmem:[#allocation2 + $0x58] sm:$0xff]  ;;  %v98_v54 = vsub.s32 0, %v97_v53  ;;  %v107_v55 = vsub.s32 1, %v97_v53  ;;  %v117_v58 = vsub.s32 2, %v97_v53 }
  0x2a   :  { %410 = vmatprep.subr.bf16.mxu0 %v525_v2  ;;  %404 = vmatprep.mubr.msk.f32.mxu1 %vm528_vm0, %v529_v20  ;;  %v420_v21 = vpack.c.bf16 %v65_v19, %v64_v18  ;;  %v73_v24 = vld [vmem:[#allocation4] sm:$0xff]  ;;  %v74_v25 = vld [vmem:[#allocation4 + $0x8] sm:$0xff]  ;;  %v75_v26 = vld [vmem:[#allocation4 + $0x10] sm:$0xff]  ;;  %v423_v27 = vpack.c.bf16 %v67_v23, %v66_v22  ;;  %v127_v60 = vsub.s32 3, %v97_v53 }
  0x2b   :  { %v432_v28 = vpack.c.bf16 %v74_v25, %v73_v24  ;;  %v76_v29 = vld [vmem:[#allocation4 + $0x18] sm:$0xff]  ;;  %v68_v30 = vld [vmem:[#allocation2 + $0x60] sm:$0xff]  ;;  %v69_v31 = vld [vmem:[#allocation2 + $0x68] sm:$0xff] }
  0x2c   :  { %467 = vset.pattern.permute.xlu0 %v526_v12  ;;  %469 = vset.pattern.permute.xlu1 %v527_v13  ;;  %v435_v32 = vpack.c.bf16 %v76_v29, %v75_v26  ;;  %v77_v33 = vld [vmem:[#allocation4 + $0x20] sm:$0xff]  ;;  %v78_v34 = vld [vmem:[#allocation4 + $0x28] sm:$0xff]  ;;  %v426_v35 = vpack.c.bf16 %v69_v31, %v68_v30  ;;  %v70_v36 = vld [vmem:[#allocation2 + $0x70] sm:$0xff] }
  0x2d   :  { %102 = vperm.xlu0 %467, %v90_v3   ;;  %122 = vperm.xlu1 %469, %v90_v3   ;;  %v71_v37 = vld [vmem:[#allocation2 + $0x78] sm:$0xff]  ;;  %v438_v38 = vpack.c.bf16 %v78_v34, %v77_v33  ;;  %v79_v39 = vld [vmem:[#allocation4 + $0x30] sm:$0xff]  ;;  %v81_v43 = vld [vmem:[#allocation4 + $0x40] sm:$0xff] }
  0x2e   :  { %412 = vmatpush3.bf16.msra.mxu0 %v411_v9  ;;  %433 = vmatpush3.bf16.msra.mxu1 %v432_v28  ;;  %v80_v40 = vld [vmem:[#allocation4 + $0x38] sm:$0xff]  ;;  %v429_v41 = vpack.c.bf16 %v71_v37, %v70_v36  ;;  %v82_v44 = vld [vmem:[#allocation4 + $0x48] sm:$0xff]  ;;  %v83_v46 = vld [vmem:[#allocation4 + $0x50] sm:$0xff] }
  0x2f   :  { %413 = vmatprep.subr.bf16.mxu0 %v525_v2  ;;  %434 = vmatprep.subr.bf16.mxu1 %v525_v2  ;;  %v441_v42 = vpack.c.bf16 %v80_v40, %v79_v39  ;;  %v444_v45 = vpack.c.bf16 %v82_v44, %v81_v43  ;;  %v84_v47 = vld [vmem:[#allocation4 + $0x58] sm:$0xff]  ;;  %v85_v49 = vld [vmem:[#allocation4 + $0x60] sm:$0xff]  ;;  %v86_v50 = vld [vmem:[#allocation4 + $0x68] sm:$0xff] }
  0x30   :  { %v447_v48 = vpack.c.bf16 %v84_v47, %v83_v46  ;;  %v450_v51 = vpack.c.bf16 %v86_v50, %v85_v49  ;;  %v54_v56 = vld [vmem:[%s629_s1] sm:$0xf] }
  0x31   :  { %470 = vset.pattern.permute.xlu0 %v527_v13  ;;  %v99_v61 = vrot.slane %v54_v56, %v98_v54  ;;  %v108_v62 = vrot.slane %v54_v56, %v107_v55  ;;  %v118_v63 = vrot.slane %v54_v56, %v117_v58  ;;  %v128_v0 = vrot.slane %v54_v56, %v127_v60  ;;  %v300_v9 = vld [vmem:[%s630_s2] ss:$0 sm:$0xff]  ;;  %v87_v13 = vld [vmem:[#allocation4 + $0x70] sm:$0xff] }
  0x32   :  { %415 = vmatpush3.bf16.msra.mxu0 %v414_v14  ;;  %436 = vmatpush3.bf16.msra.mxu1 %v435_v32  ;;  %v88_v14 = vld [vmem:[#allocation4 + $0x78] sm:$0xff]  ;;  %v301_v16 = vld [vmem:[%s632_s4] ss:$0 sm:$0xff] }
  0x33   :  { %416 = vmatprep.subr.bf16.mxu0 %v525_v2  ;;  %437 = vmatprep.subr.bf16.mxu1 %v525_v2  ;;  %v453_v15 = vpack.c.bf16 %v88_v14, %v87_v13 }
  0x36   :  { %418 = vmatpush3.bf16.msra.mxu0 %v417_v17  ;;  %439 = vmatpush3.bf16.msra.mxu1 %v438_v38 }
  0x37   :  { %419 = vmatprep.subr.bf16.mxu0 %v525_v2  ;;  %440 = vmatprep.subr.bf16.mxu1 %v525_v2 }
  0x3a   :  { %421 = vmatpush3.bf16.msra.mxu0 %v420_v21  ;;  %442 = vmatpush3.bf16.msra.mxu1 %v441_v42  ;;  %v302_v21 = vld [vmem:[%s634_s6] ss:$0 sm:$0xff] }
  0x3b   :  { %422 = vmatprep.subr.bf16.mxu0 %v525_v2  ;;  %443 = vmatprep.subr.bf16.mxu1 %v525_v2 }
  0x3e   :  { %424 = vmatpush3.bf16.msra.mxu0 %v423_v27  ;;  %445 = vmatpush3.bf16.msra.mxu1 %v444_v45 }
  0x3f   :  { %425 = vmatprep.subr.bf16.mxu0 %v525_v2  ;;  %446 = vmatprep.subr.bf16.mxu1 %v525_v2 }
  0x42   :  { %427 = vmatpush3.bf16.msra.mxu0 %v426_v35  ;;  %448 = vmatpush3.bf16.msra.mxu1 %v447_v48 }
  0x43   :  { %428 = vmatprep.subr.bf16.mxu0 %v525_v2  ;;  %449 = vmatprep.subr.bf16.mxu1 %v525_v2 }
  0x46   :  { %430 = vmatpush3.bf16.msra.mxu0 %v429_v41  ;;  %451 = vmatpush3.bf16.msra.mxu1 %v450_v51 }
  0x47   :  { %452 = vmatprep.subr.bf16.mxu1 %v525_v2 }
  0x4a   :  { %454 = vmatpush3.bf16.msra.mxu1 %v453_v15 }
  0xa7   :  { %v94_v57 = vpop.permute.xlu0 %93  ;;  %v113_v59 = vpop.permute.xlu1 %112 }
  0xa8   :  { %v100_v4 = vmul.f32 %v99_v61, %v94_v57  ;;  %v119_v5 = vmul.f32 %v118_v63, %v113_v59 }
  0xac   :  { %v103_v1 = vpop.permute.xlu0 %102  ;;  %v123_v3 = vpop.permute.xlu1 %122 }
  0xad   :  { %v109_v2 = vmul.f32 %v108_v62, %v103_v1  ;;  %v129_v7 = vmul.f32 %v128_v0, %v123_v3 }
  0xaf   :  { %v110_v6 = vadd.f32 %v109_v2, %v100_v4 }
  0xb1   :  { %v120_v8 = vadd.f32 %v119_v5, %v110_v6 }
  0xb3   :  { %v130_v10 = vadd.f32 %v129_v7, %v120_v8 }
  0xb5   :  { %v137_v11 = vadd.f32 %v300_v9, %v130_v10 }
  0xb7   :  { %v138_v12 = vmax.f32 %v137_v11, 0.0 }
  0xb9   :  { %370 = vmatmul.mubr.f32.vlgmr.msra.gmra.mrb[0].mxu0 %v138_v12 }
 0x18c   :  { %v211_v17 = vpop.f32.mrb[0].mxu0 }
 0x18d   :  { %v212_v18 = vadd.f32 %v301_v16, %v211_v17  ;;  %v371_v19 = vpop.f32.mrb[1].mxu0 }
 0x18f   :  { %v215_v20 = vmax.f32 %v212_v18, 0.0 }
 0x191   :  { %405 = vmatmul.mubr.f32.vlgmr.msra.gmra.mrb[0].mxu1 %v215_v20 }
 0x264   :  { %v288_v22 = vpop.f32.mrb[0].mxu1 }
 0x265   :  { %v289_v23 = vadd.f32 %v302_v21, %v288_v22  ;;  %v406_v24 = vpop.f32.mrb[1].mxu1 }
 0x267   :  { %293 = vst.msk [vmem:[%s635_s7] sm:$0xff] %vm292_vm1, %v289_v23 }
 0x268   :  { %298 = vsyncpa [#allocation3], 1 }
 0x269   :  { %299 = vsyncpa [#allocation5], 1 }

</bundles_post_ra>
